<compile_context>
chip_gen: v5e
topology: v5e:2x2
jax: 0.10.0
libtpu: 0.0.40
codegen_flags: <defaults>
</compile_context>

<pallas_src>
import math
from functools import partial

import jax
import jax.numpy as jnp
from jax.experimental import pallas as pl
from jax.experimental.pallas import tpu as pltpu

NEG_INF = -1e9


# ----------------------------- Pallas kernels -----------------------------

def _attn_block_kernel(*refs, nhead, dh, causal, has_kv_bias):
    """Fused: QKV projection -> per-head SDPA -> out-proj -> residual -> LayerNorm."""
    if has_kv_bias:
        (xq_ref, xkv_ref, kvb_ref, wq_ref, bq_ref, wkv_ref, bkv_ref,
         wo_ref, bo_ref, g_ref, beta_ref, o_ref) = refs
    else:
        (xq_ref, xkv_ref, wq_ref, bq_ref, wkv_ref, bkv_ref,
         wo_ref, bo_ref, g_ref, beta_ref, o_ref) = refs
        kvb_ref = None

    xq = xq_ref[0]                         # [Sq, D] f32
    xkv = xkv_ref[0]                       # [Sk, D] f32
    sq, d = xq.shape
    sk = xkv.shape[0]

    xq_b = xq.astype(jnp.bfloat16)
    xkv_b = xkv.astype(jnp.bfloat16)

    # fused projections; 1/sqrt(dh) is already folded into wq/bq at init
    q = jnp.dot(xq_b, wq_ref[...], preferred_element_type=jnp.float32) + bq_ref[...]      # [Sq, D]
    kv = jnp.dot(xkv_b, wkv_ref[...], preferred_element_type=jnp.float32) + bkv_ref[...]  # [Sk, 2D]

    # additive attention bias, built in-kernel (no [B*H, Sq, Sk] tensor ever hits HBM)
    bias = None
    if causal:
        row = jax.lax.broadcasted_iota(jnp.int32, (sq, sk), 0)
        col = jax.lax.broadcasted_iota(jnp.int32, (sq, sk), 1)
        bias = jnp.where(col > row, NEG_INF, 0.0)
    if kvb_ref is not None:
        kvb = kvb_ref[0]                   # [1, Sk] (0 or NEG_INF)
        bias = kvb if bias is None else bias + kvb

    # per-head attention; out-projection accumulated over heads (no concat / transpose)
    proj = jnp.zeros((sq, d), jnp.float32)
    for h in range(nhead):
        qh = q[:, h * dh:(h + 1) * dh].astype(jnp.bfloat16)            # [Sq, dh]
        kh = kv[:, h * dh:(h + 1) * dh].astype(jnp.bfloat16)           # [Sk, dh]
        vh = kv[:, d + h * dh:d + (h + 1) * dh].astype(jnp.bfloat16)   # [Sk, dh]
        s = jax.lax.dot_general(qh, kh, (((1,), (1,)), ((), ())),
                                preferred_element_type=jnp.float32)    # [Sq, Sk]
        if bias is not None:
            s = s + bias
        m = jnp.max(s, axis=-1, keepdims=True)
        p = jnp.exp(s - m)
        p = p * pl.reciprocal(jnp.sum(p, axis=-1, keepdims=True), approx=True)
        oh = jnp.dot(p.astype(jnp.bfloat16), vh, preferred_element_type=jnp.float32)
        proj = proj + jnp.dot(oh.astype(jnp.bfloat16), wo_ref[h],
                              preferred_element_type=jnp.float32)      # [Sq, D]
    proj = proj + bo_ref[...]

    # residual + LayerNorm (f32)
    z = xq + proj
    mu = jnp.mean(z, axis=-1, keepdims=True)
    zc = z - mu
    var = jnp.mean(zc * zc, axis=-1, keepdims=True)
    o_ref[0] = zc * jax.lax.rsqrt(var + 1e-5) * g_ref[...] + beta_ref[...]


def _ffn_block_kernel(x_ref, w1_ref, b1_ref, w2_ref, b2_ref, g_ref, beta_ref, o_ref):
    """Fused: linear1 + relu + linear2 + residual + LayerNorm."""
    x = x_ref[0]                            # [S, D] f32
    h = jnp.maximum(jnp.dot(x.astype(jnp.bfloat16), w1_ref[...],
                            preferred_element_type=jnp.float32) + b1_ref[...], 0.0)
    y = jnp.dot(h.astype(jnp.bfloat16), w2_ref[...],
                preferred_element_type=jnp.float32) + b2_ref[...]
    z = x + y
    mu = jnp.mean(z, axis=-1, keepdims=True)
    zc = z - mu
    var = jnp.mean(zc * zc, axis=-1, keepdims=True)
    o_ref[0] = zc * jax.lax.rsqrt(var + 1e-5) * g_ref[...] + beta_ref[...]


def _size_pred_kernel(*refs, n_layers):
    """Fused SizePredict MLP (linear+LN+relu per layer, final linear, mean over sequence)."""
    x_ref = refs[0]
    o_ref = refs[-1]
    h = x_ref[0]                            # [S, D] f32
    idx = 1
    for _ in range(n_layers):
        w_ref, b_ref, g_ref, be_ref = refs[idx:idx + 4]
        idx += 4
        h = jnp.dot(h.astype(jnp.bfloat16), w_ref[...],
                    preferred_element_type=jnp.float32) + b_ref[...]
        mu = jnp.mean(h, axis=-1, keepdims=True)
        hc = h - mu
        var = jnp.mean(hc * hc, axis=-1, keepdims=True)
        h = jnp.maximum(hc * jax.lax.rsqrt(var + 1e-5) * g_ref[...] + be_ref[...], 0.0)
    wo_ref, bo_ref = refs[idx], refs[idx + 1]
    out = jnp.dot(h.astype(jnp.bfloat16), wo_ref[...],
                  preferred_element_type=jnp.float32) + bo_ref[...]    # [S, 1]
    o_ref[0] = jnp.sum(out, axis=0, keepdims=True) / float(out.shape[0])


def _classifier_kernel(x_ref, lbl_ref, w_ref, b_ref, loss_ref, pred_ref,
                       *, v_real, label_smoothing):
    """Fused classifier matmul + log-softmax + label-smoothed CE + argmax (row-tiled)."""
    x = x_ref[...]                          # [rb, D] f32
    logits = jnp.dot(x.astype(jnp.bfloat16), w_ref[...],
                     preferred_element_type=jnp.float32) + b_ref[...]  # [rb, Vp]; padded cols ~NEG_INF
    m = jnp.max(logits, axis=-1, keepdims=True)
    z = logits - m
    se = jnp.sum(jnp.exp(z), axis=-1, keepdims=True)
    logp = z - jnp.log(se)

    col = jax.lax.broadcasted_iota(jnp.int32, logits.shape, 1)
    lbl = lbl_ref[...]                      # [rb, 1] int32, -100 = ignore
    nll = -jnp.sum(jnp.where(col == lbl, logp, 0.0), axis=-1, keepdims=True)
    smooth = -jnp.sum(jnp.where(col < v_real, logp, 0.0),
                      axis=-1, keepdims=True) / float(v_real)
    per_tok = (1.0 - label_smoothing) * nll + label_smoothing * smooth
    loss_ref[...] = jnp.where(lbl >= 0, per_tok, 0.0)

    vp = logits.shape[-1]
    pred = jnp.min(jnp.where(logits >= m, col, vp), axis=-1, keepdims=True)
    pred_ref[...] = pred.astype(jnp.int32)


# ------------------------------ wrappers ------------------------------

_PARALLEL = pltpu.CompilerParams(dimension_semantics=("parallel",))


def _weight_specs(weights):
    return [pl.BlockSpec(w.shape, lambda b, n=w.ndim: (0,) * n) for w in weights]


def attn_block(xq, xkv, p, *, nhead, kv_bias=None, causal=False):
    B, Sq, D = xq.shape
    Sk = xkv.shape[1]
    dh = D // nhead
    has_kv = kv_bias is not None

    args = [xq, xkv]
    in_specs = [pl.BlockSpec((1, Sq, D), lambda b: (b, 0, 0)),
                pl.BlockSpec((1, Sk, D), lambda b: (b, 0, 0))]
    if has_kv:
        args.append(kv_bias)
        in_specs.append(pl.BlockSpec((1, 1, Sk), lambda b: (b, 0, 0)))
    weights = [p['wq'], p['bq'], p['wkv'], p['bkv'], p['wo'], p['bo'], p['ln_g'], p['ln_b']]
    args.extend(weights)
    in_specs.extend(_weight_specs(weights))

    return pl.pallas_call(
        partial(_attn_block_kernel, nhead=nhead, dh=dh, causal=causal, has_kv_bias=has_kv),
        out_shape=jax.ShapeDtypeStruct((B, Sq, D), jnp.float32),
        grid=(B,),
        in_specs=in_specs,
        out_specs=pl.BlockSpec((1, Sq, D), lambda b: (b, 0, 0)),
        compiler_params=_PARALLEL,
    )(*args)


def ffn_block(x, p):
    B, S, D = x.shape
    weights = [p['w1'], p['b1'], p['w2'], p['b2'], p['ln_g'], p['ln_b']]
    in_specs = [pl.BlockSpec((1, S, D), lambda b: (b, 0, 0))] + _weight_specs(weights)
    return pl.pallas_call(
        _ffn_block_kernel,
        out_shape=jax.ShapeDtypeStruct((B, S, D), jnp.float32),
        grid=(B,),
        in_specs=in_specs,
        out_specs=pl.BlockSpec((1, S, D), lambda b: (b, 0, 0)),
        compiler_params=_PARALLEL,
    )(x, *weights)


def size_predict(states, p):
    B, S, D = states.shape
    weights = []
    for lyr in p['layers']:
        weights.extend([lyr['w'], lyr['b'], lyr['ln_g'], lyr['ln_b']])
    weights.extend([p['w_out'], p['b_out']])
    in_specs = [pl.BlockSpec((1, S, D), lambda b: (b, 0, 0))] + _weight_specs(weights)
    out = pl.pallas_call(
        partial(_size_pred_kernel, n_layers=len(p['layers'])),
        out_shape=jax.ShapeDtypeStruct((B, 1, 1), jnp.float32),
        grid=(B,),
        in_specs=in_specs,
        out_specs=pl.BlockSpec((1, 1, 1), lambda b: (b, 0, 0)),
        compiler_params=_PARALLEL,
    )(states, *weights)
    return out.reshape(B, 1)


def classifier_loss_and_preds(x2d, labels2d, w, b, *, v_real, label_smoothing):
    M, D = x2d.shape
    Vp = w.shape[1]
    rb = 8 if M % 8 == 0 else M            # row-tiled grid; lane dim stays full (Vp=128)
    loss, preds = pl.pallas_call(
        partial(_classifier_kernel, v_real=v_real, label_smoothing=label_smoothing),
        out_shape=(jax.ShapeDtypeStruct((M, 1), jnp.float32),
                   jax.ShapeDtypeStruct((M, 1), jnp.int32)),
        grid=(M // rb,),
        in_specs=[pl.BlockSpec((rb, D), lambda i: (i, 0)),
                  pl.BlockSpec((rb, 1), lambda i: (i, 0)),
                  pl.BlockSpec((D, Vp), lambda i: (0, 0)),
                  pl.BlockSpec((1, Vp), lambda i: (0, 0))],
        out_specs=(pl.BlockSpec((rb, 1), lambda i: (i, 0)),
                   pl.BlockSpec((rb, 1), lambda i: (i, 0))),
        compiler_params=_PARALLEL,
    )(x2d, labels2d, w, b)
    return loss, preds


# ------------------------------ model glue ------------------------------

def sinusoidal_pe(n_pos, d):
    pos = jnp.arange(n_pos, dtype=jnp.float32)[:, None]
    i = jnp.arange(0, d, 2, dtype=jnp.float32)[None, :]
    angle = pos / jnp.power(10000.0, i / d)
    pe = jnp.zeros((n_pos, d), jnp.float32)
    pe = pe.at[:, 0::2].set(jnp.sin(angle))
    pe = pe.at[:, 1::2].set(jnp.cos(angle))
    return pe


def transformer_forward(params, input_ids, input_mask, target_ids, target_mask,
                        pad_token_id=3, label_smoothing=0.1):
    cfg = params['cfg']
    nhead = cfg['nhead']
    B, S_in = input_ids.shape
    S_t = target_ids.shape[1]
    D = params['embedding'].shape[1]
    V = cfg['vocab_size']

    # embedding + positional encoding (gathers stay in JAX)
    input_embed = params['embedding'][input_ids]                 # [B, S_in, D]
    last_input = input_embed[:, -1:, :]                          # last token embed, pre-PE
    input_embed = input_embed + params['pe'][:S_in][None]

    # encoder; key-padding bias is a tiny [B,1,S_in] vector, expanded in-kernel
    enc_kv_bias = jnp.where(input_mask == 0, NEG_INF, 0.0).astype(jnp.float32).reshape(B, 1, S_in)
    x = input_embed
    for lp in params['encoder']:
        x = attn_block(x, x, lp['attn'], nhead=nhead, kv_bias=enc_kv_bias, causal=False)
        x = ffn_block(x, lp['ffn'])
    states = x

    # size prediction head
    target_size = size_predict(states, params['size_pred'])     # [B, 1]

    # decoder (training / teacher-forcing branch of forward())
    target_embed = params['embedding'][target_ids]
    target_embed = jnp.concatenate([last_input, target_embed[:, :-1]], axis=1)
    target_embed = target_embed + params['pe'][:S_t][None]

    dec_kv_bias = jnp.where(target_mask == 0, NEG_INF, 0.0).astype(jnp.float32).reshape(B, 1, S_t)
    y = target_embed
    for lp in params['decoder']:
        y = attn_block(y, y, lp['self_attn'], nhead=nhead, kv_bias=dec_kv_bias, causal=True)
        # cross-attention: no memory_key_padding_mask in the reference -> no bias at all
        y = attn_block(y, states, lp['cross_attn'], nhead=nhead, kv_bias=None, causal=False)
        y = ffn_block(y, lp['ffn'])

    # MSE size loss against number of non-pad target tokens
    size_target = jnp.sum(target_mask, axis=-1, keepdims=True).astype(jnp.float32)
    size_loss = jnp.mean((target_size - size_target) ** 2)

    # classifier + log-softmax + CrossEntropyLoss(label_smoothing, ignore_index=-100) + argmax
    labels = jnp.where(target_mask == 0, -100, target_ids).reshape(B * S_t, 1).astype(jnp.int32)
    loss_rows, pred_rows = classifier_loss_and_preds(
        y.reshape(B * S_t, D), labels, params['cls_w'], params['cls_b'],
        v_real=V, label_smoothing=label_smoothing)
    n_valid = jnp.maximum(jnp.sum(target_mask), 1).astype(jnp.float32)
    ce = jnp.sum(loss_rows) / n_valid

    preds = pred_rows.reshape(B, S_t)
    preds = jnp.where(target_mask == 0, pad_token_id, preds)

    return {'loss': ce + size_loss, 'preds': preds}


# ---------------------------- parameter init ----------------------------

def init_params(key, vocab_size=50, d_model=32, nhead=4, ffn=64,
                n_enc=2, n_dec=2, n_features=64, n_size_layers=2, n_poses_max=500):
    keys = iter(jax.random.split(key, 256))
    dh = d_model // nhead

    def dense(din, dout):
        w = jax.random.normal(next(keys), (din, dout), jnp.float32) * 0.02
        return w, jnp.zeros((dout,), jnp.float32)

    def ln(d):
        return jnp.ones((1, d), jnp.float32), jnp.zeros((1, d), jnp.float32)

    def attn_p():
        wq, bq = dense(d_model, d_model)
        wk, bk = dense(d_model, d_model)
        wv, bv = dense(d_model, d_model)
        wo, bo = dense(d_model, d_model)
        scale = 1.0 / math.sqrt(dh)          # folded into the Q projection
        g, b = ln(d_model)
        return dict(
            wq=(wq * scale).astype(jnp.bfloat16),
            bq=(bq * scale).reshape(1, d_model),
            wkv=jnp.concatenate([wk, wv], axis=1).astype(jnp.bfloat16),
            bkv=jnp.concatenate([bk, bv]).reshape(1, 2 * d_model),
            wo=wo.reshape(nhead, dh, d_model).astype(jnp.bfloat16),
            bo=bo.reshape(1, d_model),
            ln_g=g, ln_b=b)

    def ffn_p():
        w1, b1 = dense(d_model, ffn)
        w2, b2 = dense(ffn, d_model)
        g, b = ln(d_model)
        return dict(w1=w1.astype(jnp.bfloat16), b1=b1.reshape(1, ffn),
                    w2=w2.astype(jnp.bfloat16), b2=b2.reshape(1, d_model),
                    ln_g=g, ln_b=b)

    encoder = [dict(attn=attn_p(), ffn=ffn_p()) for _ in range(n_enc)]
    decoder = [dict(self_attn=attn_p(), cross_attn=attn_p(), ffn=ffn_p())
               for _ in range(n_dec)]

    size_layers = []
    din = d_model
    for _ in range(n_size_layers):
        w, b = dense(din, n_features)
        g, be = ln(n_features)
        size_layers.append(dict(w=w.astype(jnp.bfloat16), b=b.reshape(1, n_features),
                                ln_g=g, ln_b=be))
        din = n_features
    w_out, b_out = dense(n_features, 1)

    # classifier padded to a lane-dense vocab of 128; padded columns get NEG_INF bias so they
    # contribute ~0 to the softmax/logsumexp and can never win the argmax.
    vpad = max(128, ((vocab_size + 127) // 128) * 128)
    cls_w, cls_b = dense(d_model, vocab_size)
    cls_w_p = jnp.zeros((d_model, vpad), jnp.float32).at[:, :vocab_size].set(cls_w)
    cls_b_p = jnp.full((1, vpad), NEG_INF, jnp.float32).at[0, :vocab_size].set(cls_b)

    return dict(
        cfg=dict(nhead=nhead, d_model=d_model, vocab_size=vocab_size, vpad=vpad),
        embedding=jax.random.normal(next(keys), (vocab_size, d_model), jnp.float32) * 0.02,
        pe=sinusoidal_pe(n_poses_max, d_model),
        encoder=encoder, decoder=decoder,
        size_pred=dict(layers=size_layers,
                       w_out=w_out.astype(jnp.bfloat16), b_out=b_out.reshape(1, 1)),
        cls_w=cls_w_p.astype(jnp.bfloat16), cls_b=cls_b_p,
    )


# --------------------------------- main ---------------------------------

if __name__ == "__main__":
    key = jax.random.PRNGKey(0)
    pkey, ikey, tkey = jax.random.split(key, 3)

    B, S_in, S_t, V = 2, 8, 8, 50
    params = init_params(pkey, vocab_size=V)

    input_ids = jax.random.randint(ikey, (B, S_in), 0, V, dtype=jnp.int32)
    target_ids = jax.random.randint(tkey, (B, S_t), 0, V, dtype=jnp.int32)
    input_mask = jnp.array([[1] * 8, [1] * 6 + [0] * 2], dtype=jnp.int32)
    target_mask = jnp.array([[1] * 8, [1] * 5 + [0] * 3], dtype=jnp.int32)

    out = transformer_forward(params, input_ids, input_mask, target_ids, target_mask)
    jax.block_until_ready(out)
    assert bool(jnp.isfinite(out['loss'])), "non-finite loss"
    assert out['preds'].shape == (B, S_t)
    print("KERNEL_OK")
</pallas_src>

<mosaic_0001>
module attributes {stable_mosaic.version = 11 : i64} {
  func.func @_attn_block_kernel(%arg0: i32, %arg1: memref<1x8x32xf32, #tpu.memory_space<vmem>>, %arg2: memref<1x8x32xf32, #tpu.memory_space<vmem>>, %arg3: memref<1x1x8xf32, #tpu.memory_space<vmem>>, %arg4: memref<32x32xbf16, #tpu.memory_space<vmem>>, %arg5: memref<1x32xf32, #tpu.memory_space<vmem>>, %arg6: memref<32x64xbf16, #tpu.memory_space<vmem>>, %arg7: memref<1x64xf32, #tpu.memory_space<vmem>>, %arg8: memref<4x8x32xbf16, #tpu.memory_space<vmem>>, %arg9: memref<1x32xf32, #tpu.memory_space<vmem>>, %arg10: memref<1x32xf32, #tpu.memory_space<vmem>>, %arg11: memref<1x32xf32, #tpu.memory_space<vmem>>, %arg12: memref<1x8x32xf32, #tpu.memory_space<vmem>>) attributes {dimension_semantics = [#tpu.dimension_semantics<parallel>], iteration_bounds = array<i64: 2>, scalar_prefetch = 0 : i64, scratch_operands = 0 : i64, tpu.core_type = #tpu.core_type<tc>, window_params = [{transform_indices = @transform_0, window_bounds = array<i64: 1, 8, 32>}, {transform_indices = @transform_1, window_bounds = array<i64: 1, 8, 32>}, {transform_indices = @transform_2, window_bounds = array<i64: 1, 1, 8>}, {pipeline_mode = #tpu.pipeline_mode<synchronous>, transform_indices = @transform_3, window_bounds = array<i64: 32, 32>}, {pipeline_mode = #tpu.pipeline_mode<synchronous>, transform_indices = @transform_4, window_bounds = array<i64: 1, 32>}, {pipeline_mode = #tpu.pipeline_mode<synchronous>, transform_indices = @transform_5, window_bounds = array<i64: 32, 64>}, {pipeline_mode = #tpu.pipeline_mode<synchronous>, transform_indices = @transform_6, window_bounds = array<i64: 1, 64>}, {pipeline_mode = #tpu.pipeline_mode<synchronous>, transform_indices = @transform_7, window_bounds = array<i64: 4, 8, 32>}, {pipeline_mode = #tpu.pipeline_mode<synchronous>, transform_indices = @transform_8, window_bounds = array<i64: 1, 32>}, {pipeline_mode = #tpu.pipeline_mode<synchronous>, transform_indices = @transform_9, window_bounds = array<i64: 1, 32>}, {pipeline_mode = #tpu.pipeline_mode<synchronous>, transform_indices = @transform_10, window_bounds = array<i64: 1, 32>}, {transform_indices = @transform_11, window_bounds = array<i64: 1, 8, 32>}]} {
    %c0 = arith.constant 0 : index
    %c0_0 = arith.constant 0 : index
    %c0_1 = arith.constant 0 : index
    %0 = vector.load %arg1[%c0, %c0_0, %c0_1] : memref<1x8x32xf32, #tpu.memory_space<vmem>>, vector<1x8x32xf32>
    %1 = vector.shape_cast %0 : vector<1x8x32xf32> to vector<8x32xf32>
    %c0_2 = arith.constant 0 : index
    %c0_3 = arith.constant 0 : index
    %c0_4 = arith.constant 0 : index
    %2 = vector.load %arg2[%c0_2, %c0_3, %c0_4] : memref<1x8x32xf32, #tpu.memory_space<vmem>>, vector<1x8x32xf32>
    %3 = vector.shape_cast %2 : vector<1x8x32xf32> to vector<8x32xf32>
    %4 = arith.truncf %1 : vector<8x32xf32> to vector<8x32xbf16>
    %5 = arith.truncf %3 : vector<8x32xf32> to vector<8x32xbf16>
    %c0_5 = arith.constant 0 : index
    %c0_6 = arith.constant 0 : index
    %6 = vector.load %arg4[%c0_5, %c0_6] : memref<32x32xbf16, #tpu.memory_space<vmem>>, vector<32x32xbf16>
    %cst = arith.constant dense<0.000000e+00> : vector<8x32xf32>
    %7 = tpu.matmul %4, %6, %cst {dimension_numbers = #tpu.dot_dimension_numbers<[1], [0], [0], [1], [0, 0, 1, 1], [], []>} : vector<8x32xbf16>, vector<32x32xbf16>, vector<8x32xf32> -> vector<8x32xf32>
    %c0_7 = arith.constant 0 : index
    %c0_8 = arith.constant 0 : index
    %8 = vector.load %arg5[%c0_7, %c0_8] : memref<1x32xf32, #tpu.memory_space<vmem>>, vector<1x32xf32>
    %9 = vector.broadcast %8 : vector<1x32xf32> to vector<8x32xf32>
    %10 = arith.addf %7, %9 : vector<8x32xf32>
    %c0_9 = arith.constant 0 : index
    %c0_10 = arith.constant 0 : index
    %11 = vector.load %arg6[%c0_9, %c0_10] : memref<32x64xbf16, #tpu.memory_space<vmem>>, vector<32x64xbf16>
    %cst_11 = arith.constant dense<0.000000e+00> : vector<8x64xf32>
    %12 = tpu.matmul %5, %11, %cst_11 {dimension_numbers = #tpu.dot_dimension_numbers<[1], [0], [0], [1], [0, 0, 1, 1], [], []>} : vector<8x32xbf16>, vector<32x64xbf16>, vector<8x64xf32> -> vector<8x64xf32>
    %c0_12 = arith.constant 0 : index
    %c0_13 = arith.constant 0 : index
    %13 = vector.load %arg7[%c0_12, %c0_13] : memref<1x64xf32, #tpu.memory_space<vmem>>, vector<1x64xf32>
    %14 = vector.broadcast %13 : vector<1x64xf32> to vector<8x64xf32>
    %15 = arith.addf %12, %14 : vector<8x64xf32>
    %c0_14 = arith.constant 0 : index
    %c0_15 = arith.constant 0 : index
    %c0_16 = arith.constant 0 : index
    %16 = vector.load %arg3[%c0_14, %c0_15, %c0_16] : memref<1x1x8xf32, #tpu.memory_space<vmem>>, vector<1x1x8xf32>
    %17 = vector.shape_cast %16 : vector<1x1x8xf32> to vector<1x8xf32>
    %cst_17 = arith.constant 0.000000e+00 : f32
    %18 = vector.broadcast %cst_17 : f32 to vector<8x32xf32>
    %19 = vector.extract_strided_slice %10 {offsets = [0, 0], sizes = [8, 8], strides = [1, 1]} : vector<8x32xf32> to vector<8x8xf32>
    %20 = arith.truncf %19 : vector<8x8xf32> to vector<8x8xbf16>
    %21 = vector.extract_strided_slice %15 {offsets = [0, 0], sizes = [8, 8], strides = [1, 1]} : vector<8x64xf32> to vector<8x8xf32>
    %22 = arith.truncf %21 : vector<8x8xf32> to vector<8x8xbf16>
    %23 = vector.extract_strided_slice %15 {offsets = [0, 32], sizes = [8, 8], strides = [1, 1]} : vector<8x64xf32> to vector<8x8xf32>
    %24 = arith.truncf %23 : vector<8x8xf32> to vector<8x8xbf16>
    %cst_18 = arith.constant dense<0.000000e+00> : vector<8x8xf32>
    %25 = tpu.matmul %20, %22, %cst_18 {dimension_numbers = #tpu.dot_dimension_numbers<[1], [1], [0], [0], [0, 0, 1, 0], [], []>} : vector<8x8xbf16>, vector<8x8xbf16>, vector<8x8xf32> -> vector<8x8xf32>
    %26 = vector.broadcast %17 : vector<1x8xf32> to vector<8x8xf32>
    %27 = arith.addf %25, %26 : vector<8x8xf32>
    %cst_19 = arith.constant dense<0xFF800000> : vector<8xf32>
    %28 = vector.multi_reduction <maximumf>, %27, %cst_19 [1] : vector<8x8xf32> to vector<8xf32>
    %29 = vector.shape_cast %28 : vector<8xf32> to vector<8x1xf32>
    %30 = vector.broadcast %29 : vector<8x1xf32> to vector<8x8xf32>
    %31 = arith.subf %27, %30 : vector<8x8xf32>
    %32 = math.exp %31 : vector<8x8xf32>
    %cst_20 = arith.constant dense<0.000000e+00> : vector<8xf32>
    %33 = vector.multi_reduction <add>, %32, %cst_20 [1] : vector<8x8xf32> to vector<8xf32>
    %34 = vector.shape_cast %33 : vector<8xf32> to vector<8x1xf32>
    %35 = tpu.reciprocal %34 {approx = true} : vector<8x1xf32> -> vector<8x1xf32>
    %36 = vector.broadcast %35 : vector<8x1xf32> to vector<8x8xf32>
    %37 = arith.mulf %32, %36 : vector<8x8xf32>
    %38 = arith.truncf %37 : vector<8x8xf32> to vector<8x8xbf16>
    %cst_21 = arith.constant dense<0.000000e+00> : vector<8x8xf32>
    %39 = tpu.matmul %38, %24, %cst_21 {dimension_numbers = #tpu.dot_dimension_numbers<[1], [0], [0], [1], [0, 0, 1, 1], [], []>} : vector<8x8xbf16>, vector<8x8xbf16>, vector<8x8xf32> -> vector<8x8xf32>
    %40 = arith.truncf %39 : vector<8x8xf32> to vector<8x8xbf16>
    %c0_22 = arith.constant 0 : index
    %c0_23 = arith.constant 0 : index
    %c0_24 = arith.constant 0 : index
    %41 = vector.load %arg8[%c0_22, %c0_23, %c0_24] : memref<4x8x32xbf16, #tpu.memory_space<vmem>>, vector<1x8x32xbf16>
    %42 = vector.shape_cast %41 : vector<1x8x32xbf16> to vector<8x32xbf16>
    %cst_25 = arith.constant dense<0.000000e+00> : vector<8x32xf32>
    %43 = tpu.matmul %40, %42, %cst_25 {dimension_numbers = #tpu.dot_dimension_numbers<[1], [0], [0], [1], [0, 0, 1, 1], [], []>} : vector<8x8xbf16>, vector<8x32xbf16>, vector<8x32xf32> -> vector<8x32xf32>
    %44 = arith.addf %18, %43 : vector<8x32xf32>
    %45 = vector.extract_strided_slice %10 {offsets = [0, 8], sizes = [8, 8], strides = [1, 1]} : vector<8x32xf32> to vector<8x8xf32>
    %46 = arith.truncf %45 : vector<8x8xf32> to vector<8x8xbf16>
    %47 = vector.extract_strided_slice %15 {offsets = [0, 8], sizes = [8, 8], strides = [1, 1]} : vector<8x64xf32> to vector<8x8xf32>
    %48 = arith.truncf %47 : vector<8x8xf32> to vector<8x8xbf16>
    %49 = vector.extract_strided_slice %15 {offsets = [0, 40], sizes = [8, 8], strides = [1, 1]} : vector<8x64xf32> to vector<8x8xf32>
    %50 = arith.truncf %49 : vector<8x8xf32> to vector<8x8xbf16>
    %cst_26 = arith.constant dense<0.000000e+00> : vector<8x8xf32>
    %51 = tpu.matmul %46, %48, %cst_26 {dimension_numbers = #tpu.dot_dimension_numbers<[1], [1], [0], [0], [0, 0, 1, 0], [], []>} : vector<8x8xbf16>, vector<8x8xbf16>, vector<8x8xf32> -> vector<8x8xf32>
    %52 = vector.broadcast %17 : vector<1x8xf32> to vector<8x8xf32>
    %53 = arith.addf %51, %52 : vector<8x8xf32>
    %cst_27 = arith.constant dense<0xFF800000> : vector<8xf32>
    %54 = vector.multi_reduction <maximumf>, %53, %cst_27 [1] : vector<8x8xf32> to vector<8xf32>
    %55 = vector.shape_cast %54 : vector<8xf32> to vector<8x1xf32>
    %56 = vector.broadcast %55 : vector<8x1xf32> to vector<8x8xf32>
    %57 = arith.subf %53, %56 : vector<8x8xf32>
    %58 = math.exp %57 : vector<8x8xf32>
    %cst_28 = arith.constant dense<0.000000e+00> : vector<8xf32>
    %59 = vector.multi_reduction <add>, %58, %cst_28 [1] : vector<8x8xf32> to vector<8xf32>
    %60 = vector.shape_cast %59 : vector<8xf32> to vector<8x1xf32>
    %61 = tpu.reciprocal %60 {approx = true} : vector<8x1xf32> -> vector<8x1xf32>
    %62 = vector.broadcast %61 : vector<8x1xf32> to vector<8x8xf32>
    %63 = arith.mulf %58, %62 : vector<8x8xf32>
    %64 = arith.truncf %63 : vector<8x8xf32> to vector<8x8xbf16>
    %cst_29 = arith.constant dense<0.000000e+00> : vector<8x8xf32>
    %65 = tpu.matmul %64, %50, %cst_29 {dimension_numbers = #tpu.dot_dimension_numbers<[1], [0], [0], [1], [0, 0, 1, 1], [], []>} : vector<8x8xbf16>, vector<8x8xbf16>, vector<8x8xf32> -> vector<8x8xf32>
    %66 = arith.truncf %65 : vector<8x8xf32> to vector<8x8xbf16>
    %c1 = arith.constant 1 : index
    %c0_30 = arith.constant 0 : index
    %c0_31 = arith.constant 0 : index
    %67 = vector.load %arg8[%c1, %c0_30, %c0_31] : memref<4x8x32xbf16, #tpu.memory_space<vmem>>, vector<1x8x32xbf16>
    %68 = vector.shape_cast %67 : vector<1x8x32xbf16> to vector<8x32xbf16>
    %cst_32 = arith.constant dense<0.000000e+00> : vector<8x32xf32>
    %69 = tpu.matmul %66, %68, %cst_32 {dimension_numbers = #tpu.dot_dimension_numbers<[1], [0], [0], [1], [0, 0, 1, 1], [], []>} : vector<8x8xbf16>, vector<8x32xbf16>, vector<8x32xf32> -> vector<8x32xf32>
    %70 = arith.addf %44, %69 : vector<8x32xf32>
    %71 = vector.extract_strided_slice %10 {offsets = [0, 16], sizes = [8, 8], strides = [1, 1]} : vector<8x32xf32> to vector<8x8xf32>
    %72 = arith.truncf %71 : vector<8x8xf32> to vector<8x8xbf16>
    %73 = vector.extract_strided_slice %15 {offsets = [0, 16], sizes = [8, 8], strides = [1, 1]} : vector<8x64xf32> to vector<8x8xf32>
    %74 = arith.truncf %73 : vector<8x8xf32> to vector<8x8xbf16>
    %75 = vector.extract_strided_slice %15 {offsets = [0, 48], sizes = [8, 8], strides = [1, 1]} : vector<8x64xf32> to vector<8x8xf32>
    %76 = arith.truncf %75 : vector<8x8xf32> to vector<8x8xbf16>
    %cst_33 = arith.constant dense<0.000000e+00> : vector<8x8xf32>
    %77 = tpu.matmul %72, %74, %cst_33 {dimension_numbers = #tpu.dot_dimension_numbers<[1], [1], [0], [0], [0, 0, 1, 0], [], []>} : vector<8x8xbf16>, vector<8x8xbf16>, vector<8x8xf32> -> vector<8x8xf32>
    %78 = vector.broadcast %17 : vector<1x8xf32> to vector<8x8xf32>
    %79 = arith.addf %77, %78 : vector<8x8xf32>
    %cst_34 = arith.constant dense<0xFF800000> : vector<8xf32>
    %80 = vector.multi_reduction <maximumf>, %79, %cst_34 [1] : vector<8x8xf32> to vector<8xf32>
    %81 = vector.shape_cast %80 : vector<8xf32> to vector<8x1xf32>
    %82 = vector.broadcast %81 : vector<8x1xf32> to vector<8x8xf32>
    %83 = arith.subf %79, %82 : vector<8x8xf32>
    %84 = math.exp %83 : vector<8x8xf32>
    %cst_35 = arith.constant dense<0.000000e+00> : vector<8xf32>
    %85 = vector.multi_reduction <add>, %84, %cst_35 [1] : vector<8x8xf32> to vector<8xf32>
    %86 = vector.shape_cast %85 : vector<8xf32> to vector<8x1xf32>
    %87 = tpu.reciprocal %86 {approx = true} : vector<8x1xf32> -> vector<8x1xf32>
    %88 = vector.broadcast %87 : vector<8x1xf32> to vector<8x8xf32>
    %89 = arith.mulf %84, %88 : vector<8x8xf32>
    %90 = arith.truncf %89 : vector<8x8xf32> to vector<8x8xbf16>
    %cst_36 = arith.constant dense<0.000000e+00> : vector<8x8xf32>
    %91 = tpu.matmul %90, %76, %cst_36 {dimension_numbers = #tpu.dot_dimension_numbers<[1], [0], [0], [1], [0, 0, 1, 1], [], []>} : vector<8x8xbf16>, vector<8x8xbf16>, vector<8x8xf32> -> vector<8x8xf32>
    %92 = arith.truncf %91 : vector<8x8xf32> to vector<8x8xbf16>
    %c2 = arith.constant 2 : index
    %c0_37 = arith.constant 0 : index
    %c0_38 = arith.constant 0 : index
    %93 = vector.load %arg8[%c2, %c0_37, %c0_38] : memref<4x8x32xbf16, #tpu.memory_space<vmem>>, vector<1x8x32xbf16>
    %94 = vector.shape_cast %93 : vector<1x8x32xbf16> to vector<8x32xbf16>
    %cst_39 = arith.constant dense<0.000000e+00> : vector<8x32xf32>
    %95 = tpu.matmul %92, %94, %cst_39 {dimension_numbers = #tpu.dot_dimension_numbers<[1], [0], [0], [1], [0, 0, 1, 1], [], []>} : vector<8x8xbf16>, vector<8x32xbf16>, vector<8x32xf32> -> vector<8x32xf32>
    %96 = arith.addf %70, %95 : vector<8x32xf32>
    %97 = vector.extract_strided_slice %10 {offsets = [0, 24], sizes = [8, 8], strides = [1, 1]} : vector<8x32xf32> to vector<8x8xf32>
    %98 = arith.truncf %97 : vector<8x8xf32> to vector<8x8xbf16>
    %99 = vector.extract_strided_slice %15 {offsets = [0, 24], sizes = [8, 8], strides = [1, 1]} : vector<8x64xf32> to vector<8x8xf32>
    %100 = arith.truncf %99 : vector<8x8xf32> to vector<8x8xbf16>
    %101 = vector.extract_strided_slice %15 {offsets = [0, 56], sizes = [8, 8], strides = [1, 1]} : vector<8x64xf32> to vector<8x8xf32>
    %102 = arith.truncf %101 : vector<8x8xf32> to vector<8x8xbf16>
    %cst_40 = arith.constant dense<0.000000e+00> : vector<8x8xf32>
    %103 = tpu.matmul %98, %100, %cst_40 {dimension_numbers = #tpu.dot_dimension_numbers<[1], [1], [0], [0], [0, 0, 1, 0], [], []>} : vector<8x8xbf16>, vector<8x8xbf16>, vector<8x8xf32> -> vector<8x8xf32>
    %104 = vector.broadcast %17 : vector<1x8xf32> to vector<8x8xf32>
    %105 = arith.addf %103, %104 : vector<8x8xf32>
    %cst_41 = arith.constant dense<0xFF800000> : vector<8xf32>
    %106 = vector.multi_reduction <maximumf>, %105, %cst_41 [1] : vector<8x8xf32> to vector<8xf32>
    %107 = vector.shape_cast %106 : vector<8xf32> to vector<8x1xf32>
    %108 = vector.broadcast %107 : vector<8x1xf32> to vector<8x8xf32>
    %109 = arith.subf %105, %108 : vector<8x8xf32>
    %110 = math.exp %109 : vector<8x8xf32>
    %cst_42 = arith.constant dense<0.000000e+00> : vector<8xf32>
    %111 = vector.multi_reduction <add>, %110, %cst_42 [1] : vector<8x8xf32> to vector<8xf32>
    %112 = vector.shape_cast %111 : vector<8xf32> to vector<8x1xf32>
    %113 = tpu.reciprocal %112 {approx = true} : vector<8x1xf32> -> vector<8x1xf32>
    %114 = vector.broadcast %113 : vector<8x1xf32> to vector<8x8xf32>
    %115 = arith.mulf %110, %114 : vector<8x8xf32>
    %116 = arith.truncf %115 : vector<8x8xf32> to vector<8x8xbf16>
    %cst_43 = arith.constant dense<0.000000e+00> : vector<8x8xf32>
    %117 = tpu.matmul %116, %102, %cst_43 {dimension_numbers = #tpu.dot_dimension_numbers<[1], [0], [0], [1], [0, 0, 1, 1], [], []>} : vector<8x8xbf16>, vector<8x8xbf16>, vector<8x8xf32> -> vector<8x8xf32>
    %118 = arith.truncf %117 : vector<8x8xf32> to vector<8x8xbf16>
    %c3 = arith.constant 3 : index
    %c0_44 = arith.constant 0 : index
    %c0_45 = arith.constant 0 : index
    %119 = vector.load %arg8[%c3, %c0_44, %c0_45] : memref<4x8x32xbf16, #tpu.memory_space<vmem>>, vector<1x8x32xbf16>
    %120 = vector.shape_cast %119 : vector<1x8x32xbf16> to vector<8x32xbf16>
    %cst_46 = arith.constant dense<0.000000e+00> : vector<8x32xf32>
    %121 = tpu.matmul %118, %120, %cst_46 {dimension_numbers = #tpu.dot_dimension_numbers<[1], [0], [0], [1], [0, 0, 1, 1], [], []>} : vector<8x8xbf16>, vector<8x32xbf16>, vector<8x32xf32> -> vector<8x32xf32>
    %122 = arith.addf %96, %121 : vector<8x32xf32>
    %c0_47 = arith.constant 0 : index
    %c0_48 = arith.constant 0 : index
    %123 = vector.load %arg9[%c0_47, %c0_48] : memref<1x32xf32, #tpu.memory_space<vmem>>, vector<1x32xf32>
    %124 = vector.broadcast %123 : vector<1x32xf32> to vector<8x32xf32>
    %125 = arith.addf %122, %124 : vector<8x32xf32>
    %126 = arith.addf %1, %125 : vector<8x32xf32>
    %cst_49 = arith.constant dense<0.000000e+00> : vector<8xf32>
    %127 = vector.multi_reduction <add>, %126, %cst_49 [1] : vector<8x32xf32> to vector<8xf32>
    %128 = vector.shape_cast %127 : vector<8xf32> to vector<8x1xf32>
    %cst_50 = arith.constant 3.200000e+01 : f32
    %129 = vector.broadcast %cst_50 : f32 to vector<8x1xf32>
    %130 = arith.divf %128, %129 : vector<8x1xf32>
    %131 = vector.broadcast %130 : vector<8x1xf32> to vector<8x32xf32>
    %132 = arith.subf %126, %131 : vector<8x32xf32>
    %133 = arith.mulf %132, %132 : vector<8x32xf32>
    %cst_51 = arith.constant dense<0.000000e+00> : vector<8xf32>
    %134 = vector.multi_reduction <add>, %133, %cst_51 [1] : vector<8x32xf32> to vector<8xf32>
    %135 = vector.shape_cast %134 : vector<8xf32> to vector<8x1xf32>
    %cst_52 = arith.constant 3.200000e+01 : f32
    %136 = vector.broadcast %cst_52 : f32 to vector<8x1xf32>
    %137 = arith.divf %135, %136 : vector<8x1xf32>
    %cst_53 = arith.constant 9.99999974E-6 : f32
    %138 = vector.broadcast %cst_53 : f32 to vector<8x1xf32>
    %139 = arith.addf %137, %138 : vector<8x1xf32>
    %140 = math.rsqrt %139 : vector<8x1xf32>
    %141 = vector.broadcast %140 : vector<8x1xf32> to vector<8x32xf32>
    %142 = arith.mulf %132, %141 : vector<8x32xf32>
    %c0_54 = arith.constant 0 : index
    %c0_55 = arith.constant 0 : index
    %143 = vector.load %arg10[%c0_54, %c0_55] : memref<1x32xf32, #tpu.memory_space<vmem>>, vector<1x32xf32>
    %144 = vector.broadcast %143 : vector<1x32xf32> to vector<8x32xf32>
    %145 = arith.mulf %142, %144 : vector<8x32xf32>
    %c0_56 = arith.constant 0 : index
    %c0_57 = arith.constant 0 : index
    %146 = vector.load %arg11[%c0_56, %c0_57] : memref<1x32xf32, #tpu.memory_space<vmem>>, vector<1x32xf32>
    %147 = vector.broadcast %146 : vector<1x32xf32> to vector<8x32xf32>
    %148 = arith.addf %145, %147 : vector<8x32xf32>
    %c0_58 = arith.constant 0 : index
    %c0_59 = arith.constant 0 : index
    %c0_60 = arith.constant 0 : index
    %149 = vector.load %arg12[%c0_58, %c0_59, %c0_60] : memref<1x8x32xf32, #tpu.memory_space<vmem>>, vector<1x8x32xf32>
    %150 = vector.shape_cast %149 : vector<1x8x32xf32> to vector<8x32xf32>
    %151 = vector.shape_cast %148 : vector<8x32xf32> to vector<1x8x32xf32>
    tpu.vector_store %arg12[%c0_58, %c0_59, %c0_60], %151 {strides = array<i32>} : memref<1x8x32xf32, #tpu.memory_space<vmem>>, vector<1x8x32xf32>,
    return
  }
  func.func @transform_0(%arg0: i32) -> (i32, i32, i32) {
    %c0_i32 = arith.constant 0 : i32
    %c0_i32_0 = arith.constant 0 : i32
    %c0_i32_1 = arith.constant 0 : i32
    return %arg0, %c0_i32, %c0_i32_0 : i32, i32, i32
  }
  func.func @transform_1(%arg0: i32) -> (i32, i32, i32) {
    %c0_i32 = arith.constant 0 : i32
    %c0_i32_0 = arith.constant 0 : i32
    %c0_i32_1 = arith.constant 0 : i32
    return %arg0, %c0_i32, %c0_i32_0 : i32, i32, i32
  }
  func.func @transform_2(%arg0: i32) -> (i32, i32, i32) {
    %c0_i32 = arith.constant 0 : i32
    %c0_i32_0 = arith.constant 0 : i32
    %c0_i32_1 = arith.constant 0 : i32
    return %arg0, %c0_i32, %c0_i32_0 : i32, i32, i32
  }
  func.func @transform_3(%arg0: i32) -> (i32, i32) {
    %c0_i32 = arith.constant 0 : i32
    %c0_i32_0 = arith.constant 0 : i32
    %c0_i32_1 = arith.constant 0 : i32
    return %c0_i32, %c0_i32_0 : i32, i32
  }
  func.func @transform_4(%arg0: i32) -> (i32, i32) {
    %c0_i32 = arith.constant 0 : i32
    %c0_i32_0 = arith.constant 0 : i32
    %c0_i32_1 = arith.constant 0 : i32
    return %c0_i32, %c0_i32_0 : i32, i32
  }
  func.func @transform_5(%arg0: i32) -> (i32, i32) {
    %c0_i32 = arith.constant 0 : i32
    %c0_i32_0 = arith.constant 0 : i32
    %c0_i32_1 = arith.constant 0 : i32
    return %c0_i32, %c0_i32_0 : i32, i32
  }
  func.func @transform_6(%arg0: i32) -> (i32, i32) {
    %c0_i32 = arith.constant 0 : i32
    %c0_i32_0 = arith.constant 0 : i32
    %c0_i32_1 = arith.constant 0 : i32
    return %c0_i32, %c0_i32_0 : i32, i32
  }
  func.func @transform_7(%arg0: i32) -> (i32, i32, i32) {
    %c0_i32 = arith.constant 0 : i32
    %c0_i32_0 = arith.constant 0 : i32
    %c0_i32_1 = arith.constant 0 : i32
    %c0_i32_2 = arith.constant 0 : i32
    return %c0_i32, %c0_i32_0, %c0_i32_1 : i32, i32, i32
  }
  func.func @transform_8(%arg0: i32) -> (i32, i32) {
    %c0_i32 = arith.constant 0 : i32
    %c0_i32_0 = arith.constant 0 : i32
    %c0_i32_1 = arith.constant 0 : i32
    return %c0_i32, %c0_i32_0 : i32, i32
  }
  func.func @transform_9(%arg0: i32) -> (i32, i32) {
    %c0_i32 = arith.constant 0 : i32
    %c0_i32_0 = arith.constant 0 : i32
    %c0_i32_1 = arith.constant 0 : i32
    return %c0_i32, %c0_i32_0 : i32, i32
  }
  func.func @transform_10(%arg0: i32) -> (i32, i32) {
    %c0_i32 = arith.constant 0 : i32
    %c0_i32_0 = arith.constant 0 : i32
    %c0_i32_1 = arith.constant 0 : i32
    return %c0_i32, %c0_i32_0 : i32, i32
  }
  func.func @transform_11(%arg0: i32) -> (i32, i32, i32) {
    %c0_i32 = arith.constant 0 : i32
    %c0_i32_0 = arith.constant 0 : i32
    %c0_i32_1 = arith.constant 0 : i32
    return %arg0, %c0_i32, %c0_i32_0 : i32, i32, i32
  }
}

</mosaic_0001>

<bundles_post_ra>
// kernel: tpu_custom_call.1
= control target key start
LH: loop header
LB: loop body
LE: loop exit
PB: predicated region body
PF: predicated region fallthrough
CT: control target
= control target key end

     0   :  { %s1931_s0 = inlined_call_operand.hbm [shape: f32[2,8,32], index: 0, kind: input, shape index: {}]   ;;  %s1932_s1 = inlined_call_operand.hbm [shape: f32[2,8,32], index: 1, kind: input, shape index: {}]   ;;  %s1933_s2 = inlined_call_operand.hbm [shape: f32[2,1,8], index: 2, kind: input, shape index: {}]   ;;  %s1934_s3 = inlined_call_operand.hbm [shape: bf16[32,32], index: 3, kind: input, shape index: {}]   ;;  %s1935_s4 = inlined_call_operand.vmem [shape: f32[1,32], index: 4, kind: input, shape index: {}]   ;;  %s1936_s5 = inlined_call_operand.hbm [shape: bf16[32,64], index: 5, kind: input, shape index: {}]   ;;  %s1937_s6 = inlined_call_operand.vmem [shape: f32[1,64], index: 6, kind: input, shape index: {}]   ;;  %s1938_s7 = inlined_call_operand.hbm [shape: bf16[4,8,32], index: 7, kind: input, shape index: {}]   ;;  %s1939_s8 = inlined_call_operand.vmem [shape: f32[1,32], index: 8, kind: input, shape index: {}]   ;;  %s1940_s9 = inlined_call_operand.vmem [shape: f32[1,32], index: 9, kind: input, shape index: {}]   ;;  %s1941_s10 = inlined_call_operand.vmem [shape: f32[1,32], index: 10, kind: input, shape index: {}]   ;;  %s1942_s11 = inlined_call_operand.hbm [shape: f32[2,8,32], index: 11, kind: output, shape index: {}]  }
   0x1   :  { %1957 = sst [smem:[#allocation25_spill]] %s1932_s1 }
   0x2   :  { %1958 = sst [smem:[#allocation26_spill]] %s1934_s3 }
   0x3   :  { %1959 = sst [smem:[#allocation27_spill]] %s1940_s9 }
   0x4   :  { %1960 = sst [smem:[#allocation28_spill]] %s1941_s10 }
   0x5   :  { %1961 = sst [smem:[#allocation29_spill]] %s1942_s11 }
   0x6   :  { %16 = vsyncpa [#allocation3], 0 }
   0x7   :  { %18 = vsyncpa [#allocation3 + $0x1], 0 }
   0x8   :  { %19 = vsyncpa [#allocation6], 0 }
   0x9   :  { %21 = vsyncpa [#allocation6 + $0x1], 0 }
   0xa   :  { %22 = vsyncpa [#allocation9], 0 }
   0xb   :  { %23 = vsyncpa [#allocation12], 0 }
   0xc   :  { %24 = vsyncpa [#allocation4], 0 }
   0xd   :  { %26 = vsyncpa [#allocation4 + $0x1], 0  ;;  %s1633_s17 = smov 0   ;;  %s1635_s18 = smov 0  }
   0xe   :  { %s1637_s19 = smov 0   ;;  %s1639_s20 = smov 0  }
   0xf LB: > { %1962 = sst [smem:[#allocation19_spill]] %s1546_s17  ;;  %s1657_s24 = sadd.s32 4294967295, %s1558_s20   ;;  %s1558_s20 = sphi %s1639_s20, %s1990_s20   ;;  %s1554_s19 = sphi %s1637_s19, %s1992_s19   ;;  %s1550_s18 = sphi %s1635_s18, %s1994_s18   ;;  %s1546_s17 = sphi %s1633_s17, %s1993_s17  }
  0x10   : > { %1963 = sst [smem:[#allocation20_spill]] %s1554_s19  ;;  %p1123_p0 = scmp.ge.s32.totalorder %s1558_s20, 1 }
  0x11   : > { %s1964_s3 = sld [smem:[#allocation26_spill]]  ;;  %p1956_p1 = scmp.eq.s32.totalorder %s1657_s24, 0 }
  0x12   : > { %p309_p2 = scmp.lt.s32.totalorder %s1558_s20, 3  ;;  %s1560_s26 = smov [#allocation8]  }
  0x13   : > { %s322_s27 = sshll.u32 %s1560_s26, 4  ;;  %s1943_s29 = smov 64   ;;  %s323_s27 = int_to_ptr.vmem [resolvable:$true] %s322_s27 }
  0x14   : > { %p1662_p3 = pnand %p1123_p0, %p309_p2  ;;  %s1945_s30 = smov 4  }
  0x15   : > { %s1122_s12 = sadd.s32 4294967294, %s1558_s20   ;;  %s1682_s13 = sadd.s32 1, %s1558_s20  }
  0x16   : > { %p1197_p4 = pneg %p1662_p3  ;;  %1967 = sst [smem:[#allocation21_spill]] %s1682_s13 }
  0x17   : > { %s320_s23 = sshll.u32 %s1964_s3, 4  ;;  %s39_s14 = sadd.s32 1, %s1554_s19  ;;  %s321_s23 = int_to_ptr.hbm [resolvable:$true] %s320_s23 }
  0x18   : > { %p1671_p6 = pnand %p1197_p4, %p1956_p1  ;;  %s36_s15 = ssub.s32 %s1558_s20, %s1682_s13 }
  0x19   : > { %p46_p7 = scmp.ne.s32.totalorder %s1554_s19, %s1550_s18  ;;  %p37_p8 = scmp.eq.s32.totalorder %s36_s15, 0 }
  0x1a   : > { %1200 = dma.hbm_to_vmem [thread:$0]  (!%p1671_p6), %s321_s23, 256, %s323_s27, [#allocation9], %s1943_s29, %s1943_s29, %s1945_s30  }
  0x1b   : > { %p47_p9 = scmp.eq.s32.totalorder %s1558_s20, 0  ;;  %p52_p10 = scmp.ne.s32.totalorder %s1550_s18, %s1546_s17 }
  0x1c   : > { %p296_p11 = scmp.eq.s32.totalorder %s1657_s24, 1  ;;  %p302_p2 = scmp.eq.s32.totalorder %s1122_s12, 1 }
  0x1d   : > { %s1694_s16 = scalar_select %p37_p8, %s1554_s19, %s39_s14  }
  0x1e   : > { %p48_p12 = por %p47_p9, %p46_p7  ;;  %p1698_p13 = por %p1956_p1, %p52_p10 }
  0x1f   : > { %1968 = sst [smem:[#allocation22_spill]] %s1694_s16  ;;  %p1702_p0 = por %p296_p11, %p46_p7 }
  0x20   : > { %p1224_p4 = scmp.lt.s32.totalorder %s1558_s20, 2  ;;  %s1708_s23 = sand.u32 1, %s1554_s19  }
  0x21   : > { %s1970_s22 = scalar_select %p1702_p0, 1, 0 }
  0x22   : > { %p1710_p5 = por %p302_p2, %p52_p10  ;;  %s1955_s27 = sshll.u32 %s1708_s23, 3 }
  0x23   : > { %1971 = sst [smem:[#allocation23_spill]] %s1970_s22  ;;  %s1129_s14 = sshll.u32 %s1558_s20, 3 }
  0x24   : > { %s1972_s26 = scalar_select %p1710_p5, 1, 0 }
  0x25   : > { %p1716_p8 = pnand %p1224_p4, %p48_p12  ;;  %s398_s29 = sand.u32 1, %s1558_s20  }
  0x26   : > { %1973 = sst [smem:[#allocation24_spill]] %s1972_s26  ;;  %s402_s16 = scalar_lea.vmem [#allocation5], %s1955_s27 }
  0x27   : > { %s1975_s1 = sld [smem:[#allocation25_spill]]  ;;  %s410_s19 = sshll.u32 %s402_s16, 4  ;;  %s411_s19 = int_to_ptr.vmem [resolvable:$true] %s410_s19 }
  0x28   : > { %s337_s10 = sshll.u32 %s1936_s5, 4  ;;  %s1731_s22 = scalar_lea.sflag [#allocation6], %s398_s29  ;;  %s338_s10 = int_to_ptr.hbm [resolvable:$true] %s337_s10 }
  0x29   : > { %p1334_p9 = pneg %p1716_p8 }
  0x2d   : > { %s406_s3 = scalar_lea.hbm %s1975_s1, %s1129_s14  ;;  %s1337_s16 = scalar_lea.hbm %s1975_s1, 16 }
  0x2e   : > { %s408_s13 = sshll.u32 %s406_s3, 4  ;;  %s409_s13 = int_to_ptr.hbm [resolvable:$true] %s408_s13 }
  0x2f   : > { %s1330_s11 = sshra.s32 %s409_s13, 4  ;;  %s1331_s11 = int_to_ptr.hbm [resolvable:$true] %s1330_s11 }
  0x30   : > { %s1332_s9 = scalar_lea.hbm %s1331_s11, 8  ;;  %p1338_p12 = scmp.lt.s32.totalorder %s1331_s11, %s1975_s1 }
  0x31   : > { %p1333_p7 = scmp.ne.s32.totalorder %s1331_s11, %s1332_s9  ;;  %p1339_p2 = scmp.lt.s32.totalorder %s1337_s16, %s1332_s9 }
  0x33   : > { %p1335_p10 = pnand %p1334_p9, %p1333_p7  ;;  %p1340_p4 = por %p1339_p2, %p1338_p12 }
  0x35   : > { %p1336_p11 = pneg %p1335_p10 }
  0x37   : > { %p1341_p1 = pnand %p1340_p4, %p1336_p11 }
  0x39   : > { %1344 = shalt.err (!%p1341_p1)
}
  0x3a   : > { %1213 = dma.hbm_to_vmem [thread:$0]  (!%p1716_p8), %s409_s13, 128, %s411_s19, %s1731_s22  }
  0x3b   : > { %s1563_s17 = smov [#allocation10]   ;;  %s354_s11 = sshll.u32 %s1938_s7, 4  ;;  %s355_s11 = int_to_ptr.hbm [resolvable:$true] %s354_s11 }
  0x3c   : > { %s339_s29 = sshll.u32 %s1563_s17, 4  ;;  %s1976_s9 = smov 4   ;;  %s340_s29 = int_to_ptr.vmem [resolvable:$true] %s339_s29 }
  0x3d   : > { %s1977_s27 = smov 64   ;;  %s1564_s3 = smov [#allocation11]  }
  0x3e   : > { %1203 = dma.hbm_to_vmem [thread:$0]  (!%p1671_p6), %s338_s10, 256, %s340_s29, [#allocation9], %s1977_s27, %s1977_s27, %s1976_s9  }
  0x3f   : > { %s356_s16 = sshll.u32 %s1564_s3, 4  ;;  %s387_s12 = scalar_lea.hbm %s1931_s0, %s1129_s14  ;;  %s357_s16 = int_to_ptr.vmem [resolvable:$true] %s356_s16 }
  0x40   : > { %1206 = dma.hbm_to_vmem [thread:$0]  (!%p1671_p6), %s355_s11, 256, %s357_s16, [#allocation12], %s1977_s27, %s1977_s27, %s1976_s9  }
  0x41   : > { %s389_s17 = sshll.u32 %s387_s12, 4  ;;  %s1978_s26 = sshll.u32 %s1708_s23, 3  ;;  %s390_s17 = int_to_ptr.hbm [resolvable:$true] %s389_s17 }
  0x42   : > { %s383_s30 = scalar_lea.vmem [#allocation2], %s1978_s26  ;;  %s380_s10 = scalar_lea.sflag [#allocation3], %s1708_s23 }
  0x43   : > { %s391_s1 = sshll.u32 %s383_s30, 4  ;;  %s1420_s29 = sshra.s32 %s390_s17, 4  ;;  %s392_s1 = int_to_ptr.vmem [resolvable:$true] %s391_s1  ;;  %s1421_s29 = int_to_ptr.hbm [resolvable:$true] %s1420_s29 }
  0x44   : > { %s1422_s3 = scalar_lea.hbm %s1421_s29, 8  ;;  %s1427_s19 = scalar_lea.hbm %s1931_s0, 16 }
  0x45   : > { %p1423_p1 = scmp.ne.s32.totalorder %s1421_s29, %s1422_s3  ;;  %p1428_p6 = scmp.lt.s32.totalorder %s1421_s29, %s1931_s0 }
  0x46   : > { %p1429_p11 = scmp.lt.s32.totalorder %s1427_s19, %s1422_s3 }
  0x47   : > { %p1425_p7 = pnand %p1423_p1, %p1334_p9 }
  0x48   : > { %p1430_p12 = por %p1429_p11, %p1428_p6 }
  0x49   : > { %p1426_p10 = pneg %p1425_p7 }
  0x4b   : > { %p1431_p2 = pnand %p1430_p12, %p1426_p10 }
  0x4d   : > { %1434 = shalt.err (!%p1431_p2)
}
  0x4e   : > { %1210 = dma.hbm_to_vmem [thread:$0]  (!%p1716_p8), %s390_s17, 128, %s392_s1, %s380_s10  }
  0x4f   : > { %s423_s13 = scalar_lea.hbm %s1933_s2, %s1558_s20  ;;  %s420_s26 = scalar_lea.vmem [#allocation7], %s1708_s23 }
  0x50   : > { %s425_s12 = sshll.u32 %s423_s13, 4  ;;  %s427_s30 = sshll.u32 %s420_s26, 4  ;;  %s426_s12 = int_to_ptr.hbm [resolvable:$true] %s425_s12  ;;  %s428_s30 = int_to_ptr.vmem [resolvable:$true] %s427_s30 }
  0x51   : > { %s1450_s29 = sshra.s32 %s426_s12, 4  ;;  %s1457_s1 = scalar_lea.hbm %s1933_s2, 2  ;;  %s1451_s29 = int_to_ptr.hbm [resolvable:$true] %s1450_s29 }
  0x52   : > { %s1452_s3 = scalar_lea.hbm %s1451_s29, 1  ;;  %p1458_p10 = scmp.lt.s32.totalorder %s1451_s29, %s1933_s2 }
  0x53   : > { %p1453_p4 = scmp.ne.s32.totalorder %s1451_s29, %s1452_s3  ;;  %p1459_p6 = scmp.lt.s32.totalorder %s1457_s1, %s1452_s3 }
  0x55   : > { %p1455_p1 = pnand %p1453_p4, %p1334_p9  ;;  %p1460_p11 = por %p1459_p6, %p1458_p10 }
  0x57   : > { %p1456_p7 = pneg %p1455_p1 }
  0x59   : > { %p1461_p12 = pnand %p1460_p11, %p1456_p7 }
  0x5b   : > { %1464 = shalt.err (!%p1461_p12)
}
  0x5c   : > { %1216 = dma.hbm_to_vmem [thread:$0]  (!%p1716_p8), %s426_s12, 16, %s428_s30, %s1731_s22  }
  0x5d   : > { %436 = sbr.rel (%p1662_p3) target bundleno = 1723 (0x6bb), region = 64  ;;  %s1799_s23 = sand.u32 (!%p1662_p3), 1, %s1550_s18  }
  0x5e   : > { %s1802_s19 = sshll.u32 (!%p1662_p3), %s1799_s23, 3  ;;  %s439_s11 = scalar_lea.sflag (!%p1662_p3), [#allocation3], %s1799_s23 }
  0x5f   : > { %s442_s9 = scalar_lea.vmem (!%p1662_p3), [#allocation2], %s1802_s19 }
  0x62   : > { %1525 = dma.done.wait (%p1698_p13), %s439_s11, 128  }
  0x63   : > { %1527 = vsyncadd (%p1698_p13), %s439_s11, 4294967168  ;;  %s448_s25 = sand.u32 1, %s1657_s24   ;;  %s452_s15 = scalar_lea.vmem [#allocation5], %s1802_s19 }
  0x64   : > { %s449_s22 = scalar_lea.sflag [#allocation6], %s448_s25 }
  0x65   : > { %1529 = dma.done.wait (%p1698_p13), %s449_s22, 144  }
  0x66   : > { %1531 = vsyncadd (%p1698_p13), %s449_s22, 4294967152  ;;  %s461_s27 = scalar_lea.vmem [#allocation7], %s1799_s23  ;;  %p1979_p3 = scmp.eq.s32.totalorder %s1657_s24, 0 }
  0x68   : > { %1533 = dma.done.wait (%p1979_p3), [#allocation9], 512   ;;  %p1980_p8 = pmov %p1979_p3 }
  0x69   : > { %p1981_p9 = pmov %p1979_p3 }
  0x6a   : > { %1535 = vsyncadd (%p1980_p8), [#allocation9], 4294966784 }
  0x6b   : > { %1537 = dma.done.wait (%p1981_p9), [#allocation12], 256   ;;  %p1982_p2 = pmov %p1979_p3 }
  0x6c   : > { %v1174_v0 = vld [vmem:[#allocation8 + $0x8] sm:$0xff]  ;;  %v1176_v1 = vld [vmem:[#allocation10 + $0x8] sm:$0xff]  ;;  %v1173_v2 = vld [vmem:[#allocation8] sm:$0xff]  ;;  %vm550_vm0 = vcmask 261120   ;;  %vm609_vm1 = vcmask 64512   ;;  %s1565_s26 = smov 96  }
  0x6d   : > { %1539 = vsyncadd (%p1982_p2), [#allocation12], 4294967040  ;;  %v1175_v3 = vld [vmem:[#allocation10] sm:$0xff]  ;;  %v1825_v4 = vld [vmem:[%s442_s9] sm:$0xff]  ;;  %560 = vmatpush.bf16.msra.mxu0 %v1174_v0  ;;  %596 = vmatpush.bf16.msra.mxu1 %v1176_v1  ;;  %s1566_s30 = smov 120   ;;  %s1567_s29 = smov 104  }
  0x6e   : > { %v527_v5 = vld [vmem:[%s452_s15] sm:$0xff]  ;;  %v528_v6 = vpack.c.bf16 %v1825_v4, %v1825_v4  ;;  %v1274_v8 = vld [vmem:[%s1935_s4] ss:$0 sm:$0xff]  ;;  %s1568_s3 = smov 112   ;;  %vm647_vm2 = vcmask 1043456   ;;  %s1569_s28 = smov 88  }
  0x6f   : > { %v529_v7 = vpack.c.bf16 %v527_v5, %v527_v5  ;;  %v1275_v9 = vld [vmem:[%s1937_s6] ss:$0 sm:$0xff]  ;;  %v665_v19 = vld [vmem:[#allocation11] sm:$0xf]  ;;  %s1570_s14 = smov 80   ;;  %s1571_s1 = smov 72  }
  0x70   : > { %v749_v20 = vsel %vm647_vm2, %v665_v19, 0  ;;  %v1276_v28 = vld [vmem:[%s461_s27] ss:$0 sm:$0xff]  ;;  %s1170_s11 = sshll.u32 %s1657_s24, 3  ;;  %s1983_s22 = sld [smem:[#allocation27_spill]] }
  0x71   : > { %561 = vmatpush.bf16.msra.mxu0 %v1173_v2  ;;  %597 = vmatpush.bf16.msra.mxu1 %v1175_v3  ;;  %s1984_s21 = sld [smem:[#allocation29_spill]]  ;;  %s524_s24 = scalar_lea.vmem [#allocation13], %s1802_s19 }
  0x74   : > { %1147 = vmatmul.msk.bf16.vlgmr.msra.gmra.mxu0 %vm550_vm0, %v528_v6  ;;  %1156 = vmatmul.msk.bf16.vlgmr.msra.gmra.mxu1 %vm550_vm0, %v529_v7 }
  0x77   : > { %s979_s16 = scalar_lea.hbm %s1984_s21, %s1170_s11  ;;  %s1500_s19 = scalar_lea.hbm %s1984_s21, 16 }
  0xf1   : > { %v563_v10 = vpop.f32.mrf.mxu0  ;;  %v599_v11 = vpop.f32.mrf.mxu1 }
  0xf2   : > { %v564_v12 = vadd.f32 %v1274_v8, %v563_v10  ;;  %v600_v13 = vadd.f32 %v1275_v9, %v599_v11 }
  0xf4   : > { %v604_v14 = vpack.c.bf16 %v564_v12, %v564_v12  ;;  %v1837_v15 = vpack.c.bf16 %v600_v13, %v600_v13 }
  0xf6   : > { %642 = vrot.lane.b32.xlu1 %v1837_v15, %s1565_s26  ;;  %667 = vrot.lane.b32.xlu2 %v604_v14, %s1566_s30  ;;  %v614_v16 = vsel %vm609_vm1, %v1837_v15, 0 }
  0xf7   : > { %623 = vmatpush.bf16.xpose.msra.mxu2 %v614_v16 }
  0xf9   : > { %v565_v17 = vpop.f32.mrf.mxu0  ;;  %v601_v18 = vpop.f32.mrf.mxu1 }
  0xfe   : > { %669 = vrot.lane.b32.xlu1 %v1837_v15, %s1566_s30  ;;  %845 = vrot.lane.b32.xlu2 %v1837_v15, %s1567_s29  ;;  %s1986_s30 = sld [smem:[#allocation28_spill]] }
  0xff   : > { %1157 = vmatmul.msk.bf16.vlgmr.msra.gmra.mxu2 %vm609_vm1, %v604_v14 }
 0x100   : > { %758 = vmatpush.bf16.msrb.mxu2 %v749_v20 }
 0x106   : > { %843 = vrot.lane.b32.xlu1 %v604_v14, %s1567_s29  ;;  %764 = vrot.lane.b32.xlu2 %v604_v14, %s1568_s3  ;;  %s981_s29 = sshll.u32 %s524_s24, 4  ;;  %s982_s29 = int_to_ptr.vmem [resolvable:$true] %s981_s29 }
 0x150   : > { %v668_v21 = vpop.permute.xlu2 %667 }
 0x158   : > { %v846_v22 = vpop.permute.xlu2 %845 }
 0x159   : > { %v851_v23 = vsel %vm609_vm1, %v846_v22, 0 }
 0x15a   : > { %860 = vmatpush.bf16.xpose.msra.mxu2 %v851_v23 }
 0x160   : > { %v765_v44 = vpop.permute.xlu2 %764 }
 0x168   : > { %v643_v24 = vpop.permute.xlu1 %642 }
 0x169   : > { %v649_v25 = vsel %vm647_vm2, %v643_v24, 0 }
 0x16a   : > { %658 = vmatpush.bf16.msra.mxu3 %v649_v25 }
 0x170   : > { %v670_v26 = vpop.permute.xlu1 %669 }
 0x171   : > { %v675_v27 = vsel %vm609_vm1, %v670_v26, 0 }
 0x172   : > { %684 = vmatpush.bf16.xpose.msrb.mxu3 %v675_v27 }
 0x178   : > { %v844_v50 = vpop.permute.xlu1 %843 }
 0x182   : > { %v625_v29 = vpop.f32.mrf.mxu2 }
 0x183   : > { %v626_v30 = vadd.f32 %v1276_v28, %v625_v29 }
 0x185   : > { %v629_v31 = vsel %vm609_vm1, %v626_v30, -inf }
 0x186   : > { %630 = vmax.xlane.f32.xlu0 %v629_v31 }
 0x18a   : > { %v627_v32 = vpop.f32.mrf.mxu2 }
 0x1f9   : > { %v631_v33 = vpop.xlane.xlu0 %630 }
 0x1fa   : > { %v632_v34 = vsub.f32 %v626_v30, %v631_v33  ;;  %v822_v30 = vld [vmem:[#allocation11 + $0x8] sm:$0xf] }
 0x1fb   : > { %v827_v32 = vsel %vm647_vm2, %v822_v30, 0 }
 0x1fc   : > { %v633_v35 = vmul.f32 1.442695, %v632_v34 }
 0x1fe   : > { %1280 = vpow2.f32 %v633_v35 }
 0x204   : > { %v1281_v36 = vpop.eup %1280 }
 0x205   : > { %v635_v37 = vsel %vm609_vm1, %v1281_v36, 0.0 }
 0x206   : > { %636 = vadd.xlane.f32.xlu0 %v635_v37 }
 0x21a   : > { %766 = vrot.lane.b32.xlu0 %v1837_v15, %s1568_s3  ;;  %s983_s3 = sshll.u32 %s979_s16, 4  ;;  %s984_s3 = int_to_ptr.hbm [resolvable:$true] %s983_s3 }
 0x279   : > { %v637_v38 = vpop.xlane.xlu0 %636 }
 0x27a   : > { %1282 = vrcp.f32 %v637_v38 }
 0x280   : > { %v1283_v39 = vpop.eup %1282 }
 0x281   : > { %v639_v40 = vmul.f32 %v1283_v39, %v1281_v36 }
 0x283   : > { %v640_v41 = vpack.c.bf16 %v639_v40, %v639_v40 }
 0x285   : > { %1158 = vmatmul.msk.bf16.vlgmr.msra.gmra.mxu3 %vm609_vm1, %v640_v41 }
 0x28c   : > { %v767_v42 = vpop.permute.xlu0 %766 }
 0x28d   : > { %v772_v43 = vsel %vm609_vm1, %v767_v42, 0 }
 0x28e   : > { %781 = vmatpush.bf16.xpose.msra.mxu3 %v772_v43  ;;  %v901_v43 = vld [vmem:[#allocation11 + $0xc] sm:$0xf] }
 0x295   : > { %1159 = vmatmul.msk.bf16.vlgmr.msrb.gmra.mxu3 %vm609_vm1, %v668_v21 }
 0x2a5   : > { %1163 = vmatmul.msk.bf16.vlgmr.msra.gmra.mxu3 %vm609_vm1, %v765_v44  ;;  %v906_v44 = vsel %vm647_vm2, %v901_v43, 0 }
 0x308   : > { %v660_v45 = vpop.f32.mrf.mxu3 }
 0x309   : > { %v664_v46 = vpack.c.bf16 %v660_v45, %v660_v45 }
 0x30b   : > { %1162 = vmatmul.msk.bf16.vlgmr.msrb.gmra.mxu2 %vm609_vm1, %v664_v46 }
 0x310   : > { %v662_v47 = vpop.f32.mrf.mxu3 }
 0x318   : > { %v686_v48 = vpop.f32.mrf.mxu3 }
 0x319   : > { %v687_v49 = vadd.f32 %v1276_v28, %v686_v48 }
 0x31b   : > { %1166 = vmatmul.msk.bf16.vlgmr.msra.gmra.mxu2 %vm609_vm1, %v844_v50  ;;  %v690_v51 = vsel %vm609_vm1, %v687_v49, -inf }
 0x31c   : > { %691 = vmax.xlane.f32.xlu1 %v690_v51 }
 0x320   : > { %v688_v52 = vpop.f32.mrf.mxu3 }
 0x328   : > { %v783_v53 = vpop.f32.mrf.mxu3 }
 0x329   : > { %v784_v54 = vadd.f32 %v1276_v28, %v783_v53 }
 0x32b   : > { %v787_v55 = vsel %vm609_vm1, %v784_v54, -inf }
 0x32c   : > { %788 = vmax.xlane.f32.xlu0 %v787_v55 }
 0x330   : > { %v785_v56 = vpop.f32.mrf.mxu3 }
 0x335   : > { %702 = vrot.lane.b32.xlu1 %v1837_v15, %s1569_s28  ;;  %s969_s28 = scalar_lea.sflag [#allocation4], %s1799_s23 }
 0x38e   : > { %v1863_v57 = vpop.f32.mrf.mxu2 }
 0x38f   : > { %v692_v58 = vpop.xlane.xlu1 %691 }
 0x390   : > { %v693_v60 = vsub.f32 %v687_v49, %v692_v58 }
 0x392   : > { %v694_v61 = vmul.f32 1.442695, %v693_v60 }
 0x394   : > { %1284 = vpow2.f32 %v694_v61 }
 0x396   : > { %v762_v59 = vpop.f32.mrf.mxu2 }
 0x39a   : > { %v1285_v5 = vpop.eup %1284 }
 0x39b   : > { %v696_v9 = vsel %vm609_vm1, %v1285_v5, 0.0 }
 0x39e   : > { %v862_v62 = vpop.f32.mrf.mxu2 }
 0x39f   : > { %v863_v63 = vadd.f32 %v1276_v28, %v862_v62  ;;  %v789_v0 = vpop.xlane.xlu0 %788  ;;  %v725_v28 = vld [vmem:[#allocation11 + $0x4] sm:$0xf]  ;;  %v1572_v62 = vmov 32.0  }
 0x3a0   : > { %v790_v1 = vsub.f32 %v784_v54, %v789_v0  ;;  %v730_v29 = vsel %vm647_vm2, %v725_v28, 0  ;;  %v1277_v54 = vld [vmem:[%s1939_s8] ss:$0 sm:$0xff] }
 0x3a1   : > { %v866_v2 = vsel %vm609_vm1, %v863_v63, -inf  ;;  %739 = vmatpush.bf16.msrb.mxu1 %v730_v29 }
 0x3a2   : > { %v791_v3 = vmul.f32 1.442695, %v790_v1  ;;  %867 = vmax.xlane.f32.xlu2 %v866_v2 }
 0x3a4   : > { %1286 = vpow2.f32 %v791_v3 }
 0x3a5   : > { %836 = vmatpush.bf16.msra.mxu1 %v827_v32 }
 0x3a6   : > { %v864_v6 = vpop.f32.mrf.mxu2 }
 0x3a7   : > { %v703_v7 = vpop.permute.xlu1 %702 }
 0x3a8   : > { %v708_v8 = vsel %vm647_vm2, %v703_v7, 0 }
 0x3a9   : > { %717 = vmatpush.bf16.msrb.mxu0 %v708_v8 }
 0x3aa   : > { %v1287_v10 = vpop.eup %1286  ;;  %697 = vadd.xlane.f32.xlu2 %v696_v9 }
 0x3ab   : > { %v793_v11 = vsel %vm609_vm1, %v1287_v10, 0.0 }
 0x3ac   : > { %794 = vadd.xlane.f32.xlu0 %v793_v11 }
 0x3c0   : > { %799 = vrot.lane.b32.xlu0 %v1837_v15, %s1570_s14  ;;  %s1494_s14 = sshra.s32 %s984_s3, 4  ;;  %s1495_s14 = int_to_ptr.hbm [resolvable:$true] %s1494_s14 }
 0x3c1   : > { %p1501_p7 = scmp.lt.s32.totalorder %s1495_s14, %s1984_s21 }
 0x415   : > { %v868_v12 = vpop.xlane.xlu2 %867 }
 0x416   : > { %v869_v13 = vsub.f32 %v863_v63, %v868_v12 }
 0x418   : > { %v870_v14 = vmul.f32 1.442695, %v869_v13 }
 0x41a   : > { %1288 = vpow2.f32 %v870_v14 }
 0x41d   : > { %v698_v16 = vpop.xlane.xlu2 %697 }
 0x41e   : > { %1290 = vrcp.f32 %v698_v16 }
 0x41f   : > { %v795_v21 = vpop.xlane.xlu0 %794 }
 0x420   : > { %v1289_v17 = vpop.eup %1288  ;;  %1292 = vrcp.f32 %v795_v21 }
 0x421   : > { %v872_v18 = vsel %vm609_vm1, %v1289_v17, 0.0 }
 0x422   : > { %873 = vadd.xlane.f32.xlu2 %v872_v18 }
 0x424   : > { %v1291_v19 = vpop.eup %1290 }
 0x425   : > { %v700_v20 = vmul.f32 %v1291_v19, %v1285_v5  ;;  %v1278_v19 = vld [vmem:[%s1983_s22] ss:$0 sm:$0xff] }
 0x426   : > { %v1293_v23 = vpop.eup %1292 }
 0x427   : > { %v701_v22 = vpack.c.bf16 %v700_v20, %v700_v20  ;;  %v797_v25 = vmul.f32 %v1293_v23, %v1287_v10 }
 0x429   : > { %1160 = vmatmul.msk.bf16.vlgmr.msrb.gmra.mxu0 %vm609_vm1, %v701_v22  ;;  %v798_v27 = vpack.c.bf16 %v797_v25, %v797_v25  ;;  %v1279_v22 = vld [vmem:[%s1986_s30] ss:$0 sm:$0xff] }
 0x432   : > { %v800_v24 = vpop.permute.xlu0 %799 }
 0x433   : > { %v805_v26 = vsel %vm647_vm2, %v800_v24, 0 }
 0x434   : > { %814 = vmatpush.bf16.msra.mxu0 %v805_v26 }
 0x438   : > { %915 = vmatpush.bf16.msrb.mxu0 %v906_v44 }
 0x439   : > { %1164 = vmatmul.msk.bf16.vlgmr.msra.gmra.mxu0 %vm609_vm1, %v798_v27 }
 0x43a   : > { %878 = vrot.lane.b32.xlu2 %v1837_v15, %s1571_s1  ;;  %s1496_s1 = scalar_lea.hbm %s1495_s14, 8 }
 0x43b   : > { %p1497_p13 = scmp.ne.s32.totalorder %s1495_s14, %s1496_s1  ;;  %p1502_p10 = scmp.lt.s32.totalorder %s1500_s19, %s1496_s1 }
 0x43d   : > { %p1498_p4 = pnand %p1497_p13, %p1702_p0  ;;  %p1503_p6 = por %p1502_p10, %p1501_p7 }
 0x43f   : > { %p1499_p1 = pneg %p1498_p4 }
 0x441   : > { %p1504_p11 = pnand %p1503_p6, %p1499_p1 }
 0x495   : > { %v874_v31 = vpop.xlane.xlu2 %873 }
 0x496   : > { %1294 = vrcp.f32 %v874_v31 }
 0x497   : > { %1296 = vrcp.f32 %v1572_v62 }
 0x49c   : > { %v1295_v33 = vpop.eup %1294 }
 0x49d   : > { %v876_v34 = vmul.f32 %v1295_v33, %v1289_v17  ;;  %v879_v35 = vpop.permute.xlu2 %878  ;;  %v1297_v63 = vpop.eup %1296 }
 0x49e   : > { %v884_v36 = vsel %vm647_vm2, %v879_v35, 0  ;;  %vm936_vm3 = vweird.f32 %v1297_v63 }
 0x49f   : > { %v877_v37 = vpack.c.bf16 %v876_v34, %v876_v34  ;;  %893 = vmatpush.bf16.msrb.mxu3 %v884_v36 }
 0x4a2   : > { %1167 = vmatmul.msk.bf16.vlgmr.msrb.gmra.mxu3 %vm609_vm1, %v877_v37 }
 0x4a6   : > { %v719_v15 = vpop.f32.mrf.mxu0 }
 0x4a7   : > { %v723_v38 = vpack.c.bf16 %v719_v15, %v719_v15 }
 0x4a9   : > { %1161 = vmatmul.msk.bf16.vlgmr.msrb.gmra.mxu1 %vm609_vm1, %v723_v38 }
 0x4ae   : > { %v721_v39 = vpop.f32.mrf.mxu0 }
 0x4b6   : > { %v816_v40 = vpop.f32.mrf.mxu0 }
 0x4b7   : > { %v820_v41 = vpack.c.bf16 %v816_v40, %v816_v40 }
 0x4b9   : > { %1165 = vmatmul.msk.bf16.vlgmr.msra.gmra.mxu1 %vm609_vm1, %v820_v41 }
 0x4be   : > { %v818_v42 = vpop.f32.mrf.mxu0 }
 0x525   : > { %v895_v45 = vpop.f32.mrf.mxu3 }
 0x526   : > { %v899_v46 = vpack.c.bf16 %v895_v45, %v895_v45  ;;  %v741_v47 = vpop.f32.mrf.mxu1 }
 0x527   : > { %v761_v50 = vadd.f32 %v1863_v57, %v741_v47  ;;  %v932_v57 = vmul.f32 32.0, %v1297_v63 }
 0x528   : > { %1168 = vmatmul.msk.bf16.vlgmr.msrb.gmra.mxu0 %vm609_vm1, %v899_v46 }
 0x529   : > { %v933_v0 = vsub.f32 1.0, %v932_v57 }
 0x52b   : > { %v934_v1 = vmul.f32 %v1297_v63, %v933_v0 }
 0x52d   : > { %v897_v48 = vpop.f32.mrf.mxu3  ;;  %v935_v2 = vadd.f32 %v1297_v63, %v934_v1 }
 0x52e   : > { %v743_v49 = vpop.f32.mrf.mxu1 }
 0x52f   : > { %v937_v3 = vsel %vm936_vm3, %v1297_v63, %v935_v2 }
 0x536   : > { %v838_v51 = vpop.f32.mrf.mxu1 }
 0x537   : > { %v842_v52 = vadd.f32 %v838_v51, %v761_v50 }
 0x53e   : > { %v840_v53 = vpop.f32.mrf.mxu1 }
 0x5a5   : > { %v917_v55 = vpop.f32.mrf.mxu0 }
 0x5a6   : > { %v921_v56 = vadd.f32 %v917_v55, %v842_v52 }
 0x5a8   : > { %v926_v58 = vadd.f32 %v1277_v54, %v921_v56 }
 0x5aa   : > { %v927_v59 = vadd.f32 %v926_v58, %v1825_v4 }
 0x5ac   : > { %v928_v60 = vsel %vm550_vm0, %v927_v59, 0.0 }
 0x5ad   : > { %929 = vadd.xlane.f32.xlu1 %v928_v60  ;;  %v919_v61 = vpop.f32.mrf.mxu0 }
 0x620   : > { %v930_v5 = vpop.xlane.xlu1 %929 }
 0x621   : > { %v938_v6 = vmul.f32 %v937_v3, %v930_v5 }
 0x623   : > { %v939_v7 = vsub.f32 %v927_v59, %v938_v6 }
 0x625   : > { %v940_v8 = vmul.f32 %v939_v7, %v939_v7 }
 0x627   : > { %v941_v4 = vsel %vm550_vm0, %v940_v8, 0.0 }
 0x628   : > { %942 = vadd.xlane.f32.xlu2 %v941_v4 }
 0x69b   : > { %v943_v9 = vpop.xlane.xlu2 %942 }
 0x69c   : > { %v944_v10 = vmul.f32 %v943_v9, %v937_v3 }
 0x69e   : > { %v945_v11 = vadd.f32 1e-05, %v944_v10 }
 0x6a0   : > { %1298 = vrsqrt.f32 %v945_v11  ;;  %vm952_vm5 = vweird.f32 %v945_v11 }
 0x6a6   : > { %v1299_v12 = vpop.eup %1298 }
 0x6a7   : > { %v947_v13 = vmul.f32 %v1299_v12, %v945_v11  ;;  %vm953_vm4 = vweird.f32 %v1299_v12 }
 0x6a8   : > { %vm954_vm6 = vmor %vm952_vm5, %vm953_vm4 }
 0x6a9   : > { %v948_v14 = vmul.f32 %v1299_v12, %v947_v13 }
 0x6ab   : > { %v949_v16 = vmul.f32 0.5, %v948_v14 }
 0x6ad   : > { %v950_v17 = vsub.f32 1.5, %v949_v16 }
 0x6af   : > { %v951_v18 = vmul.f32 %v1299_v12, %v950_v17 }
 0x6b1   : > { %v955_v20 = vsel %vm954_vm6, %v1299_v12, %v951_v18 }
 0x6b2   : > { %v956_v21 = vmul.f32 %v955_v20, %v939_v7 }
 0x6b4   : > { %v961_v23 = vmul.f32 %v1278_v19, %v956_v21 }
 0x6b6   : > { %v966_v24 = vadd.f32 %v1279_v22, %v961_v23 }
 0x6b8   : > { %967 = vst.msk [vmem:[%s524_s24] sm:$0xff] %vm550_vm0, %v966_v24 }
 0x6b9   : > { %1507 = shalt.err (!%p1504_p11)
}
 0x6ba   : > { %1195 = dma.vmem_to_hbm [thread:$0]  (%p1702_p0), %s982_s29, 128, %s984_s3, %s969_s28  }
 0x6bb PF: > { %s1987_s23 = sld [smem:[#allocation19_spill]]  ;;  %p1989_p12 = scmp.ge.s32.totalorder %s1558_s20, 2 }
 0x6bd   : > { %p1218_p3 = pnand %p1989_p12, %p1710_p5 }
 0x6bf   : > { %p1219_p8 = pneg %p1218_p3 }
 0x6c1   : > { %s995_s22 = sand.u32 1, %s1987_s23  }
 0x6c2   : > { %s996_s15 = scalar_lea.sflag [#allocation4], %s995_s22 }
 0x6c3   : > { %1541 = dma.done.wait (%p1219_p8), %s996_s15, 128  }
 0x6c4   : > { %1543 = vsyncadd (%p1219_p8), %s996_s15, 4294967168  ;;  %s1990_s20 = sld [smem:[#allocation21_spill]]  ;;  %s1993_s17 = smov %s1550_s18 }
 0x6c5   : > { %s1991_s27 = sld [smem:[#allocation20_spill]] }
 0x6c6   : > { %s1992_s19 = sld [smem:[#allocation22_spill]] }
 0x6ca   : > { %p29_p9 = scmp.ge.s32.totalorder %s1990_s20, 4  }
 0x6cb   : > { %s1994_s18 = smov %s1991_s27 }
 0x6cc   :  { %31 = sbr.rel (!%p29_p9) target bundleno = 15 (0xf), region = 148 }
 0x6d1   :  { %1002 = vsyncpa [#allocation3], 1 }
 0x6d2   :  { %1004 = vsyncpa [#allocation3 + $0x1], 1 }
 0x6d3   :  { %1005 = vsyncpa [#allocation6], 1 }
 0x6d4   :  { %1007 = vsyncpa [#allocation6 + $0x1], 1 }
 0x6d5   :  { %1008 = vsyncpa [#allocation9], 1 }
 0x6d6   :  { %1009 = vsyncpa [#allocation12], 1 }
 0x6d7   :  { %1010 = vsyncpa [#allocation4], 1 }
 0x6d8   :  { %1012 = vsyncpa [#allocation4 + $0x1], 1 }

</bundles_post_ra>
